<compile_context>
chip_gen: v7x
topology: tpu7x:2x2x1
jax: 0.10.0
libtpu: 0.0.40
codegen_flags: <defaults>
</compile_context>

<pallas_src>
import jax
import jax.numpy as jnp
from jax.experimental import pallas as pl
from jax.experimental.pallas import tpu as pltpu

_LANES = 128
_SMALL_PROBLEM_ELEMS = 64 * 1024     # below this, fused XLA elementwise wins
_MAX_BLOCK_ROWS = 8192               # 8192 * 128 * 4 B = 4 MiB per f32 block
_SINGLE_BLOCK_ROWS = 1024            # <= 0.5 MiB: one block, no pipelining win


def _round_up(x, m):
    return ((x + m - 1) // m) * m


def _mix_kernel(s_ref, x_ref, o_ref):
    # s_ref: (3,) SMEM scalar-prefetch ref -> [s_pos, s_neg, b2]
    # x_ref: (block_rows, 128) VMEM slab of the flattened input
    # o_ref: (block_rows, 128) VMEM output slab
    x = x_ref[...]
    s_pos = s_ref[0]
    s_neg = s_ref[1]
    b2 = s_ref[2]
    o_ref[...] = x * jnp.where(x > 0.0, s_pos, s_neg) + b2


def _fold_params(w1, w2, b2):
    """Fold (1x1 conv -> ReLU -> 1x1 conv + bias) into two scalars + bias."""
    w1_f = w1.reshape(-1).astype(jnp.float32)             # (10,)
    w2_f = w2.reshape(-1).astype(jnp.float32)             # (10,)
    prod = w1_f * w2_f
    s_pos = jnp.sum(jnp.where(w1_f > 0.0, prod, 0.0))     # channels active for x > 0
    s_neg = jnp.sum(jnp.where(w1_f > 0.0, 0.0, prod))     # channels active for x <= 0
    return s_pos, s_neg, b2.reshape(()).astype(jnp.float32)


def dummy_model_mix_forward(x_nchw, w1, w2, b2, *, force_pallas=False):
    """x_nchw: (N, 1, H, W) float32.  Returns (N, 1, H, W) float32.

    w1: (10, 1)  sampled BayesConv2d weight (C_out, C_in) for 1x1 conv, no bias
    w2: (1, 10)  Conv2d weight (C_out, C_in) for 1x1 conv
    b2: (1,)     Conv2d bias
    """
    n, cin, h, w = x_nchw.shape
    assert cin == 1, "BayesConv2d(1, ...) requires a single input channel"
    m = n * h * w

    s_pos, s_neg, b2s = _fold_params(w1, w2, b2)

    # Small-problem fast path: kernel launch + pipeline setup dominates below
    # ~64K elements; XLA's fused elementwise op is strictly faster there.
    if m < _SMALL_PROBLEM_ELEMS and not force_pallas:
        x = x_nchw.astype(jnp.float32)
        return x * jnp.where(x > 0.0, s_pos, s_neg) + b2s

    # Cin == 1, so NCHW flatten is already lane-dense.  Pad to a multiple of
    # 128 lanes (ragged shapes supported), reshape to a 2-D slab.
    x_flat = x_nchw.astype(jnp.float32).reshape(-1)
    m_pad = _round_up(m, _LANES)
    if m_pad != m:
        x_flat = jnp.pad(x_flat, (0, m_pad - m))
    rows = m_pad // _LANES
    x_slab = x_flat.reshape(rows, _LANES)

    # Block size: single block for small slabs; otherwise up to 4 MiB blocks
    # with at least 2 grid steps (gives both v7x TensorCores work) and a
    # cdiv grid so the ragged last block is handled by Pallas masking.
    # VMEM footprint: (in + out) * 2 buffers * 4 MiB = 16 MiB < 32 MiB scoped
    # default on all of v5e / v6e / v7x.
    if rows <= _SINGLE_BLOCK_ROWS:
        block_rows = rows                      # full extent, (8,128) rule satisfied
    else:
        block_rows = min(_MAX_BLOCK_ROWS, _round_up(pl.cdiv(rows, 2), 8))
    grid = (pl.cdiv(rows, block_rows),)

    # [s_pos, s_neg, b2] land in SMEM once, before the grid runs.
    scalars = jnp.stack([s_pos, s_neg, b2s])   # (3,) float32

    cost = pl.CostEstimate(
        flops=4 * m_pad, transcendentals=0, bytes_accessed=8 * m_pad)

    out_slab = pl.pallas_call(
        _mix_kernel,
        out_shape=jax.ShapeDtypeStruct((rows, _LANES), jnp.float32),
        grid_spec=pltpu.PrefetchScalarGridSpec(
            num_scalar_prefetch=1,
            grid=grid,
            # index_maps receive the scalar-prefetch ref as a trailing arg.
            in_specs=[
                pl.BlockSpec((block_rows, _LANES), lambda i, s: (i, 0)),
            ],
            out_specs=pl.BlockSpec((block_rows, _LANES), lambda i, s: (i, 0)),
        ),
        compiler_params=pltpu.CompilerParams(
            dimension_semantics=("parallel",)),
        cost_estimate=cost,
    )(scalars, x_slab)

    out_flat = out_slab.reshape(-1)
    if m_pad != m:
        out_flat = out_flat[:m]
    return out_flat.reshape(n, cin, h, w)


def _reference(x_nchw, w1, w2, b2):
    # Pure-JAX reference of the original module math (1x1 convs as channel matmuls).
    x = jnp.transpose(x_nchw, (0, 2, 3, 1))                       # NHWC
    y = jnp.maximum(jnp.einsum("nhwc,oc->nhwo", x, w1), 0.0)      # BayesConv2d + ReLU
    z = jnp.einsum("nhwc,oc->nhwo", y, w2) + b2                   # Conv2d(10,1,1)
    return jnp.transpose(z, (0, 3, 1, 2))


if __name__ == "__main__":
    key = jax.random.PRNGKey(0)
    k_x, k_mu, k_rho, k_eps, k_w2, k_b2 = jax.random.split(key, 6)

    # BayesConv2d(1, 10, 1, bias=False): deterministic reparameterized sample.
    mu = 0.1 * jax.random.normal(k_mu, (10, 1), dtype=jnp.float32)
    rho = -3.0 + 0.1 * jax.random.normal(k_rho, (10, 1), dtype=jnp.float32)
    eps = jax.random.normal(k_eps, (10, 1), dtype=jnp.float32)
    w1 = mu + jnp.logaddexp(rho, 0.0) * eps            # mu + softplus(rho) * eps

    # Conv2d(10, 1, 1): weight (1, 10, 1, 1) -> (1, 10), bias (1,)
    w2 = 0.1 * jax.random.normal(k_w2, (1, 10), dtype=jnp.float32)
    b2 = 0.1 * jax.random.normal(k_b2, (1,), dtype=jnp.float32)

    # Case A: canonical small test shape (module requires Cin=1); force the
    # Pallas path so the kernel itself is exercised.
    xa = jax.random.normal(k_x, (2, 1, 16, 16), dtype=jnp.float32)
    out_a = jax.block_until_ready(
        dummy_model_mix_forward(xa, w1, w2, b2, force_pallas=True))
    ref_a = _reference(xa, w1, w2, b2)
    assert out_a.shape == xa.shape, out_a.shape
    assert jnp.allclose(out_a, ref_a, atol=1e-5, rtol=1e-5), "case A mismatch"

    # Case B: ragged size (m not a multiple of 128) -> pad/slice path.
    xb = jax.random.normal(k_x, (2, 1, 255, 129), dtype=jnp.float32)
    out_b = jax.block_until_ready(dummy_model_mix_forward(xb, w1, w2, b2))
    ref_b = _reference(xb, w1, w2, b2)
    assert out_b.shape == xb.shape, out_b.shape
    assert jnp.allclose(out_b, ref_b, atol=1e-5, rtol=1e-5), "case B mismatch"

    # Case C: multi-step grid with a partial last block (rows > 1024).
    xc = jax.random.normal(k_x, (2, 1, 512, 257), dtype=jnp.float32)
    out_c = jax.block_until_ready(dummy_model_mix_forward(xc, w1, w2, b2))
    ref_c = _reference(xc, w1, w2, b2)
    assert out_c.shape == xc.shape, out_c.shape
    assert jnp.allclose(out_c, ref_c, atol=1e-5, rtol=1e-5), "case C mismatch"

    print("KERNEL_OK")
</pallas_src>

<mosaic_0001>
module attributes {stable_mosaic.version = 11 : i64} {
  func.func @_mix_kernel(%arg0: i32, %arg1: memref<3xf32, #tpu.memory_space<smem>>, %arg2: memref<4x128xf32, #tpu.memory_space<vmem>>, %arg3: memref<4x128xf32, #tpu.memory_space<vmem>>) attributes {dimension_semantics = [#tpu.dimension_semantics<parallel>], iteration_bounds = array<i64: 1>, scalar_prefetch = 1 : i64, scratch_operands = 0 : i64, tpu.core_type = #tpu.core_type<tc>, window_params = [{transform_indices = @transform_0, window_bounds = array<i64: 4, 128>}, {transform_indices = @transform_1, window_bounds = array<i64: 4, 128>}]} {
    %c0 = arith.constant 0 : index
    %c0_0 = arith.constant 0 : index
    %0 = vector.load %arg2[%c0, %c0_0] : memref<4x128xf32, #tpu.memory_space<vmem>>, vector<4x128xf32>
    %c0_1 = arith.constant 0 : index
    %1 = memref.load %arg1[%c0_1] : memref<3xf32, #tpu.memory_space<smem>>
    %c1 = arith.constant 1 : index
    %2 = memref.load %arg1[%c1] : memref<3xf32, #tpu.memory_space<smem>>
    %c2 = arith.constant 2 : index
    %3 = memref.load %arg1[%c2] : memref<3xf32, #tpu.memory_space<smem>>
    %cst = arith.constant 0.000000e+00 : f32
    %4 = vector.broadcast %cst : f32 to vector<4x128xf32>
    %5 = arith.cmpf ogt, %0, %4 : vector<4x128xf32>
    %6 = vector.broadcast %1 : f32 to vector<4x128xf32>
    %7 = vector.broadcast %2 : f32 to vector<4x128xf32>
    %8 = arith.select %5, %6, %7 : vector<4x128xi1>, vector<4x128xf32>
    %9 = arith.mulf %0, %8 : vector<4x128xf32>
    %10 = vector.broadcast %3 : f32 to vector<4x128xf32>
    %11 = arith.addf %9, %10 : vector<4x128xf32>
    %c0_2 = arith.constant 0 : index
    %c0_3 = arith.constant 0 : index
    %12 = vector.load %arg3[%c0_2, %c0_3] : memref<4x128xf32, #tpu.memory_space<vmem>>, vector<4x128xf32>
    tpu.vector_store %arg3[%c0_2, %c0_3], %11 {strides = array<i32>} : memref<4x128xf32, #tpu.memory_space<vmem>>, vector<4x128xf32>,
    return
  }
  func.func @transform_0(%arg0: i32, %arg1: memref<3xf32, #tpu.memory_space<smem>>) -> (i32, i32) {
    %c0_i32 = arith.constant 0 : i32
    %c0_i32_0 = arith.constant 0 : i32
    return %arg0, %c0_i32 : i32, i32
  }
  func.func @transform_1(%arg0: i32, %arg1: memref<3xf32, #tpu.memory_space<smem>>) -> (i32, i32) {
    %c0_i32 = arith.constant 0 : i32
    %c0_i32_0 = arith.constant 0 : i32
    return %arg0, %c0_i32 : i32, i32
  }
}

</mosaic_0001>

<bundles_post_ra>
// kernel: tpu_custom_call.1
= control target key start
LH: loop header
LB: loop body
LE: loop exit
PB: predicated region body
PF: predicated region fallthrough
CT: control target
= control target key end

     0   :  { %s172_s0 = inlined_call_operand.hbm [shape: f32[3], index: 0, kind: input, shape index: {}]   ;;  %s173_s1 = inlined_call_operand.hbm [shape: f32[4,128], index: 1, kind: input, shape index: {}]   ;;  %s174_s2 = inlined_call_operand.hbm [shape: f32[4,128], index: 2, kind: output, shape index: {}]  }
   0x1   :  { %s58_s11 = scalar_lea.hbm %s172_s0, 16 }
   0x2   :  { %p59_p0 = scmp.ne.s32.totalorder %s172_s0, %s58_s11  ;;  %p62_p1 = scmp.lt.u32.totalorder %s58_s11, %s172_s0 }
   0x4   :  { %p64_p2 = pnand %p62_p1, %p59_p0 }
   0x6   :  { %67 = shalt.err (!%p64_p2)  }
   0x7   :  { %s118_s16 = smov [#allocation3]  }
   0x8   :  { %8 = dma.hbm_to_smem %s172_s0, 16, %s118_s16, [#allocation2] }
   0x9   :  { %112 = dma.done.wait [#allocation2], 16 }
   0xa   :  { %113 = vsyncadd [#allocation2], 4294967280 }
   0xb   :  { %10 = sfence }
   0xc   :  { %11 = vsyncpa [#allocation5], 0 }
   0xd   :  { %12 = vsyncpa [#allocation6], 0  ;;  %s119_s19 = smov [#allocation4]   ;;  %s68_s23 = scalar_lea.hbm %s173_s1, 64 }
   0xe   :  { %s19_s20 = sshll.u32 %s119_s19, 4  ;;  %p69_p3 = scmp.ne.s32.totalorder %s173_s1, %s68_s23  ;;  %s20_s20 = int_to_ptr.vmem [resolvable:$true] %s19_s20 }
   0xf   :  { %p72_p4 = scmp.lt.u32.totalorder %s68_s23, %s173_s1 }
  0x11   :  { %p74_p5 = pnand %p72_p4, %p69_p3 }
  0x13   :  { %77 = shalt.err (!%p74_p5)
}
  0x14   :  { %s78_s0 = scalar_lea.vmem %s20_s20, 64  ;;  %p83_p7 = scmp.lt.s32.totalorder %s20_s20, %s20_s20 }
  0x15   :  { %p79_p6 = scmp.ne.s32.totalorder %s20_s20, %s78_s0  ;;  %p84_p8 = scmp.lt.s32.totalorder %s78_s0, %s78_s0 }
  0x17   :  { %p85_p9 = por %p84_p8, %p83_p7 }
  0x19   :  { %p86_p10 = pnand %p85_p9, %p79_p6 }
  0x1b   :  { %89 = shalt.err (!%p86_p10)
}
  0x1c   :  { %22 = dma.hbm_to_vmem [thread:$0]  %s173_s1, 64, %s20_s20, [#allocation5]  }
  0x1d   :  { %114 = dma.done.wait [#allocation5], 64  }
  0x1e   :  { %115 = vsyncadd [#allocation5], 4294967232  ;;  %s27_s30 = sld [smem:[#allocation3]]  ;;  %s53_s3 = sld [smem:[#allocation3 + $0x1]]  ;;  %v26_v0 = vld [vmem:[#allocation4] sm:$0xf] }
  0x1f   :  { %s54_s4 = sld [smem:[#allocation3 + $0x2]]  ;;  %vm30_vm0 = vcmp.gt.f32.partialorder %v26_v0, 0.0  ;;  %s120_s5 = smov [#allocation7]  }
  0x20   :  { %s44_s6 = sshll.u32 %s120_s5, 4  ;;  %s45_s6 = int_to_ptr.vmem [resolvable:$true] %s44_s6 }
  0x21   :  { %s90_s7 = scalar_lea.vmem %s45_s6, 64  ;;  %p95_p12 = scmp.lt.s32.totalorder %s45_s6, %s45_s6 }
  0x22   :  { %p91_p11 = scmp.ne.s32.totalorder %s45_s6, %s90_s7  ;;  %p96_p13 = scmp.lt.s32.totalorder %s90_s7, %s90_s7 }
  0x24   :  { %v31_v1 = vstv %s27_s30  ;;  %v32_v2 = vstv %s53_s3  ;;  %p97_p0 = por %p96_p13, %p95_p12 }
  0x25   :  { %v33_v3 = vsel %vm30_vm0, %v31_v1, %v32_v2  ;;  %v35_v4 = vstv %s54_s4 }
  0x26   :  { %v34_v5 = vmul.f32 %v33_v3, %v26_v0  ;;  %p98_p1 = pnand %p97_p0, %p91_p11 }
  0x28   :  { %v36_v6 = vadd.f32 %v35_v4, %v34_v5 }
  0x2a   :  { %37 = vst [vmem:[#allocation7] sm:$0xf] %v36_v6 }
  0x2b   :  { %101 = shalt.err (!%p98_p1)
}
  0x2c   :  { %s102_s9 = scalar_lea.hbm %s174_s2, 64 }
  0x2d   :  { %p103_p2 = scmp.ne.s32.totalorder %s174_s2, %s102_s9  ;;  %p106_p3 = scmp.lt.u32.totalorder %s102_s9, %s174_s2 }
  0x2f   :  { %p108_p4 = pnand %p106_p3, %p103_p2 }
  0x31   :  { %111 = shalt.err (!%p108_p4)
}
  0x32   :  { %47 = dma.vmem_to_hbm [thread:$0]  %s45_s6, 64, %s174_s2, [#allocation6]  }
  0x33   :  { %116 = dma.done.wait [#allocation6], 64  }
  0x34   :  { %117 = vsyncadd [#allocation6], 4294967232 }
  0x35   :  { %51 = vsyncpa [#allocation5], 1 }
  0x36   :  { %52 = vsyncpa [#allocation6], 1 }

</bundles_post_ra>
